<compile_context>
chip_gen: v6e
topology: v6e:2x2x1
jax: 0.10.0
libtpu: 0.0.40
codegen_flags: <defaults>
</compile_context>

<pallas_src>
import functools

import jax
import jax.numpy as jnp
from jax.experimental import pallas as pl
from jax.experimental.pallas import tpu as pltpu


def bottleneck_kernel(x_ref, w1_ref, w2_ref, w3_ref, b_ref, mask_ref, out_ref,
                      *, W, HW, NB):
    # x_ref:    (NB, Cin, HW)          NB images per grid step, lane-dense spatial axis
    # w1_ref:   (Wp, Cin)              1x1 conv, BN1 scale folded, rows zero-padded to Wp
    # w2_ref:   (Wp, 9*Wp)             3x3 conv, taps flattened (ky,kx,ci), BN2 folded
    # w3_ref:   (Cout, Wp)             1x1 conv, BN3 scale folded
    # b_ref:    (3, Cb, 1)             packed folded BN biases (broadcast along lanes)
    # mask_ref: (9*Wp, NB*HW)          precomputed 0/1 zero-padding mask for the 9 taps
    Wp = w1_ref.shape[0]
    Cout = w3_ref.shape[0]
    L = NB * HW

    # Flatten the NB images of this block onto the lane axis: (Cin, NB*HW).
    if NB > 1:
        x = jnp.concatenate([x_ref[n] for n in range(NB)], axis=1)
    else:
        x = x_ref[0]

    bias = b_ref[...]                                        # (3, Cb, 1), one tiny load

    # conv1 (1x1) + bias + relu : single matmul over all NB*HW lanes.
    y1 = jnp.dot(w1_ref[...], x, preferred_element_type=jnp.float32)
    y1 = jnp.maximum(y1 + bias[0, :Wp], 0.0)                 # (Wp, L)

    # conv2 (3x3, padding=1, stride=1): 9 lane-rolled taps (XLU), one constant-mask
    # multiply for zero padding (also kills cross-image wrap), one K = 9*Wp matmul.
    taps = []
    for ky in range(3):
        for kx in range(3):
            d = (ky - 1) * W + (kx - 1)                      # flat offset of this tap
            taps.append(y1 if d == 0 else pltpu.roll(y1, (-d) % L, 1))  # V[:,p]=y1[:,p+d]
    t = jnp.concatenate(taps, axis=0) * mask_ref[...]        # (9*Wp, L), tile-aligned
    y2 = jnp.dot(w2_ref[...], t, preferred_element_type=jnp.float32)
    y2 = jnp.maximum(y2 + bias[1, :Wp], 0.0)                 # (Wp, L)

    # conv3 (1x1) + bias, residual add (stride==1 identity), relu.
    y3 = jnp.dot(w3_ref[...], y2, preferred_element_type=jnp.float32)
    y = jnp.maximum(y3 + bias[2, :Cout] + x, 0.0)            # (Cout, L)

    # Lane-dense stores, one image at a time (slices at multiples of HW=256 lanes).
    for n in range(NB):
        out_ref[n] = y[:, n * HW:(n + 1) * HW]


def prepare_params(pt_w1, pt_w2, pt_w3, bn1, bn2, bn3, eps=1e-5):
    """Fold eval-mode BN scales into the conv weights, pad width to a full 8-sublane
    tile, and pack the three folded biases into one array."""
    def fold(gamma, beta, mean, var):
        s = gamma / jnp.sqrt(var + eps)
        return s, beta - mean * s

    s1, b1 = fold(*bn1)
    s2, b2 = fold(*bn2)
    s3, b3 = fold(*bn3)

    width, cin = pt_w1.shape[:2]
    cout = pt_w3.shape[0]
    wp = max(8, ((width + 7) // 8) * 8)          # pad width so each tap = one (8,128) tile

    # conv1: (width, Cin, 1, 1) -> (wp, Cin), BN1 scale folded, zero-padded output rows.
    w1 = jnp.zeros((wp, cin), jnp.float32).at[:width].set(
        (pt_w1[:, :, 0, 0] * s1[:, None]).astype(jnp.float32))
    # conv2: (width, width, 3, 3) -> (wp, 9*wp), taps flattened (ky, kx, ci), zero-padded.
    w2f = jnp.zeros((wp, wp, 3, 3), jnp.float32).at[:width, :width].set(
        (pt_w2 * s2[:, None, None, None]).astype(jnp.float32))
    w2 = jnp.transpose(w2f, (0, 2, 3, 1)).reshape(wp, 9 * wp)
    # conv3: (Cout, width, 1, 1) -> (Cout, wp), zero-padded input columns.
    w3 = jnp.zeros((cout, wp), jnp.float32).at[:, :width].set(
        (pt_w3[:, :, 0, 0] * s3[:, None]).astype(jnp.float32))

    cb = max(wp, cout)
    b = jnp.zeros((3, cb, 1), jnp.float32)
    b = b.at[0, :width, 0].set(b1).at[1, :width, 0].set(b2).at[2, :cout, 0].set(b3)
    return w1, w2, w3, b


def make_conv2_mask(H, W, NB, wp):
    """Constant (9*wp, NB*H*W) 0/1 f32 mask: zero-padding for the 9 rolled taps.
    row/col are derived from lane % (H*W) so wraps across image boundaries are zeroed."""
    HW = H * W
    lane = jnp.arange(NB * HW, dtype=jnp.int32)
    row = (lane % HW) // W
    col = lane % W
    pieces = []
    for ky in range(3):
        for kx in range(3):
            m = jnp.ones_like(lane, dtype=bool)
            if ky == 0:
                m = m & (row >= 1)
            elif ky == 2:
                m = m & (row <= H - 2)
            if kx == 0:
                m = m & (col >= 1)
            elif kx == 2:
                m = m & (col <= W - 2)
            pieces.append(jnp.broadcast_to(m[None, :], (wp, NB * HW)))
    return jnp.concatenate(pieces, axis=0).astype(jnp.float32)


def bottleneck_forward(x_nchw, params, images_per_block=None):
    """x_nchw: (N, Cin, H, W) float32. Returns (N, Cout, H, W).

    images_per_block: images processed per grid step. Default = N (one grid step,
    minimal overhead). On v7x set N // 2 so the 2-wide "parallel" grid engages both
    TensorCores."""
    w1, w2, w3, b = params
    N, Cin, H, W = x_nchw.shape
    Cout = w3.shape[0]
    wp = w1.shape[0]
    HW = H * W
    if Cin != Cout:
        raise ValueError("stride==1 identity residual requires inplanes == planes*expansion")

    NB = N if images_per_block is None else images_per_block
    assert N % NB == 0
    num_blocks = N // NB

    x = x_nchw.reshape(N, Cin, HW)       # free: NCHW is already C-major, spatial-last
    mask = make_conv2_mask(H, W, NB, wp)

    kernel = functools.partial(bottleneck_kernel, W=W, HW=HW, NB=NB)

    out = pl.pallas_call(
        kernel,
        out_shape=jax.ShapeDtypeStruct((N, Cout, HW), jnp.float32),
        grid_spec=pl.GridSpec(
            grid=(num_blocks,),
            in_specs=[
                pl.BlockSpec((NB, Cin, HW), lambda i: (i, 0, 0)),
                pl.BlockSpec(w1.shape, lambda i: (0, 0)),
                pl.BlockSpec(w2.shape, lambda i: (0, 0)),
                pl.BlockSpec(w3.shape, lambda i: (0, 0)),
                pl.BlockSpec(b.shape, lambda i: (0, 0, 0)),
                pl.BlockSpec(mask.shape, lambda i: (0, 0)),
            ],
            out_specs=pl.BlockSpec((NB, Cout, HW), lambda i: (i, 0, 0)),
        ),
        compiler_params=pltpu.CompilerParams(dimension_semantics=("parallel",)),
    )(x, w1, w2, w3, b, mask)
    return out.reshape(N, Cout, H, W)


def reference_forward(x, pt_w1, pt_w2, pt_w3, bn_params, eps=1e-5):
    """Pure-JAX NCHW reference matching the PyTorch module (eval-mode BN)."""
    dn = ('NCHW', 'OIHW', 'NCHW')

    def conv(inp, w, pad):
        return jax.lax.conv_general_dilated(inp, w, (1, 1), [(pad, pad), (pad, pad)],
                                            dimension_numbers=dn)

    def bn(inp, p):
        g, b, m, v = p
        return (inp - m[None, :, None, None]) / jnp.sqrt(v[None, :, None, None] + eps) \
            * g[None, :, None, None] + b[None, :, None, None]

    out = jax.nn.relu(bn(conv(x, pt_w1, 0), bn_params[0]))
    out = jax.nn.relu(bn(conv(out, pt_w2, 1), bn_params[1]))
    out = bn(conv(out, pt_w3, 0), bn_params[2])
    return jax.nn.relu(out + x)


if __name__ == "__main__":
    # Module config: Bottleneck(inplanes=8, planes=4), stride=1, groups=1, base_width=64
    # => width = 4, out channels = planes * expansion = 8 (== inplanes, as required).
    inplanes, planes = 8, 4
    width = planes
    cout = planes * 2
    N, H, W = 2, 16, 16

    key = jax.random.PRNGKey(0)
    k1, k2, k3, kx = jax.random.split(key, 4)

    # Deterministic "PyTorch-layout" (OIHW) conv weights.
    pt_w1 = jax.random.normal(k1, (width, inplanes, 1, 1), jnp.float32) * 0.2
    pt_w2 = jax.random.normal(k2, (width, width, 3, 3), jnp.float32) * 0.2
    pt_w3 = jax.random.normal(k3, (cout, width, 1, 1), jnp.float32) * 0.2

    # Deterministic BN params (gamma, beta, running_mean, running_var).
    def make_bn(c, off):
        g = 1.0 + 0.1 * jnp.arange(c, dtype=jnp.float32)
        b = 0.05 * jnp.arange(c, dtype=jnp.float32) - off
        m = 0.02 * jnp.arange(c, dtype=jnp.float32)
        v = 1.0 + 0.03 * jnp.arange(c, dtype=jnp.float32)
        return g, b, m, v

    bn1, bn2, bn3 = make_bn(width, 0.1), make_bn(width, 0.2), make_bn(cout, 0.3)
    params = prepare_params(pt_w1, pt_w2, pt_w3, bn1, bn2, bn3)

    x = jax.random.normal(kx, (N, inplanes, H, W), jnp.float32)

    y = bottleneck_forward(x, params)            # single grid step, whole batch on lanes
    jax.block_until_ready(y)

    y_ref = reference_forward(x, pt_w1, pt_w2, pt_w3, (bn1, bn2, bn3))
    assert y.shape == (N, cout, H, W)
    max_err = float(jnp.max(jnp.abs(y - y_ref)))
    assert max_err < 1e-3, max_err

    print("KERNEL_OK")
</pallas_src>

<mosaic_0001>
module attributes {stable_mosaic.version = 11 : i64} {
  func.func @bottleneck_kernel(%arg0: i32, %arg1: memref<2x8x256xf32, #tpu.memory_space<vmem>>, %arg2: memref<8x8xf32, #tpu.memory_space<vmem>>, %arg3: memref<8x72xf32, #tpu.memory_space<vmem>>, %arg4: memref<8x8xf32, #tpu.memory_space<vmem>>, %arg5: memref<3x8x1xf32, #tpu.memory_space<vmem>>, %arg6: memref<72x512xf32, #tpu.memory_space<vmem>>, %arg7: memref<2x8x256xf32, #tpu.memory_space<vmem>>) attributes {dimension_semantics = [#tpu.dimension_semantics<parallel>], iteration_bounds = array<i64: 1>, scalar_prefetch = 0 : i64, scratch_operands = 0 : i64, tpu.core_type = #tpu.core_type<tc>, window_params = [{transform_indices = @transform_0, window_bounds = array<i64: 2, 8, 256>}, {pipeline_mode = #tpu.pipeline_mode<synchronous>, transform_indices = @transform_1, window_bounds = array<i64: 8, 8>}, {pipeline_mode = #tpu.pipeline_mode<synchronous>, transform_indices = @transform_2, window_bounds = array<i64: 8, 72>}, {pipeline_mode = #tpu.pipeline_mode<synchronous>, transform_indices = @transform_3, window_bounds = array<i64: 8, 8>}, {pipeline_mode = #tpu.pipeline_mode<synchronous>, transform_indices = @transform_4, window_bounds = array<i64: 3, 8, 1>}, {pipeline_mode = #tpu.pipeline_mode<synchronous>, transform_indices = @transform_5, window_bounds = array<i64: 72, 512>}, {transform_indices = @transform_6, window_bounds = array<i64: 2, 8, 256>}]} {
    %c0 = arith.constant 0 : index
    %c0_0 = arith.constant 0 : index
    %c0_1 = arith.constant 0 : index
    %0 = vector.load %arg1[%c0, %c0_0, %c0_1] : memref<2x8x256xf32, #tpu.memory_space<vmem>>, vector<1x8x256xf32>
    %1 = vector.shape_cast %0 : vector<1x8x256xf32> to vector<8x256xf32>
    %c1 = arith.constant 1 : index
    %c0_2 = arith.constant 0 : index
    %c0_3 = arith.constant 0 : index
    %2 = vector.load %arg1[%c1, %c0_2, %c0_3] : memref<2x8x256xf32, #tpu.memory_space<vmem>>, vector<1x8x256xf32>
    %3 = vector.shape_cast %2 : vector<1x8x256xf32> to vector<8x256xf32>
    %4 = tpu.concatenate %1, %3 in 1 : vector<8x256xf32>, vector<8x256xf32> -> vector<8x512xf32>
    %c0_4 = arith.constant 0 : index
    %c0_5 = arith.constant 0 : index
    %c0_6 = arith.constant 0 : index
    %5 = vector.load %arg5[%c0_4, %c0_5, %c0_6] : memref<3x8x1xf32, #tpu.memory_space<vmem>>, vector<3x8x1xf32>
    %c0_7 = arith.constant 0 : index
    %c0_8 = arith.constant 0 : index
    %6 = vector.load %arg2[%c0_7, %c0_8] : memref<8x8xf32, #tpu.memory_space<vmem>>, vector<8x8xf32>
    %cst = arith.constant dense<0.000000e+00> : vector<8x512xf32>
    %7 = tpu.matmul %6, %4, %cst {dimension_numbers = #tpu.dot_dimension_numbers<[1], [0], [0], [1], [0, 0, 1, 1], [], []>} : vector<8x8xf32>, vector<8x512xf32>, vector<8x512xf32> -> vector<8x512xf32>
    %8 = vector.extract_strided_slice %5 {offsets = [0, 0, 0], sizes = [1, 8, 1], strides = [1, 1, 1]} : vector<3x8x1xf32> to vector<1x8x1xf32>
    %9 = vector.shape_cast %8 : vector<1x8x1xf32> to vector<8x1xf32>
    %10 = vector.broadcast %9 : vector<8x1xf32> to vector<8x512xf32>
    %11 = arith.addf %7, %10 : vector<8x512xf32>
    %cst_9 = arith.constant 0.000000e+00 : f32
    %12 = vector.broadcast %cst_9 : f32 to vector<8x512xf32>
    %13 = arith.maximumf %11, %12 : vector<8x512xf32>
    %c17_i32 = arith.constant 17 : i32
    %14 = tpu.dynamic_rotate %13 by %c17_i32 dim 1 : vector<8x512xf32>, i32 -> vector<8x512xf32>
    %c16_i32 = arith.constant 16 : i32
    %15 = tpu.dynamic_rotate %13 by %c16_i32 dim 1 : vector<8x512xf32>, i32 -> vector<8x512xf32>
    %c15_i32 = arith.constant 15 : i32
    %16 = tpu.dynamic_rotate %13 by %c15_i32 dim 1 : vector<8x512xf32>, i32 -> vector<8x512xf32>
    %c1_i32 = arith.constant 1 : i32
    %17 = tpu.dynamic_rotate %13 by %c1_i32 dim 1 : vector<8x512xf32>, i32 -> vector<8x512xf32>
    %c511_i32 = arith.constant 511 : i32
    %18 = tpu.dynamic_rotate %13 by %c511_i32 dim 1 : vector<8x512xf32>, i32 -> vector<8x512xf32>
    %c497_i32 = arith.constant 497 : i32
    %19 = tpu.dynamic_rotate %13 by %c497_i32 dim 1 : vector<8x512xf32>, i32 -> vector<8x512xf32>
    %c496_i32 = arith.constant 496 : i32
    %20 = tpu.dynamic_rotate %13 by %c496_i32 dim 1 : vector<8x512xf32>, i32 -> vector<8x512xf32>
    %c495_i32 = arith.constant 495 : i32
    %21 = tpu.dynamic_rotate %13 by %c495_i32 dim 1 : vector<8x512xf32>, i32 -> vector<8x512xf32>
    %22 = tpu.concatenate %14, %15, %16, %17, %13, %18, %19, %20, %21 in 0 : vector<8x512xf32>, vector<8x512xf32>, vector<8x512xf32>, vector<8x512xf32>, vector<8x512xf32>, vector<8x512xf32>, vector<8x512xf32>, vector<8x512xf32>, vector<8x512xf32> -> vector<72x512xf32>
    %c0_10 = arith.constant 0 : index
    %c0_11 = arith.constant 0 : index
    %23 = vector.load %arg6[%c0_10, %c0_11] : memref<72x512xf32, #tpu.memory_space<vmem>>, vector<72x512xf32>
    %24 = arith.mulf %22, %23 : vector<72x512xf32>
    %c0_12 = arith.constant 0 : index
    %c0_13 = arith.constant 0 : index
    %25 = vector.load %arg3[%c0_12, %c0_13] : memref<8x72xf32, #tpu.memory_space<vmem>>, vector<8x72xf32>
    %cst_14 = arith.constant dense<0.000000e+00> : vector<8x512xf32>
    %26 = tpu.matmul %25, %24, %cst_14 {dimension_numbers = #tpu.dot_dimension_numbers<[1], [0], [0], [1], [0, 0, 1, 1], [], []>} : vector<8x72xf32>, vector<72x512xf32>, vector<8x512xf32> -> vector<8x512xf32>
    %27 = vector.extract_strided_slice %5 {offsets = [1, 0, 0], sizes = [1, 8, 1], strides = [1, 1, 1]} : vector<3x8x1xf32> to vector<1x8x1xf32>
    %28 = vector.shape_cast %27 : vector<1x8x1xf32> to vector<8x1xf32>
    %29 = vector.broadcast %28 : vector<8x1xf32> to vector<8x512xf32>
    %30 = arith.addf %26, %29 : vector<8x512xf32>
    %cst_15 = arith.constant 0.000000e+00 : f32
    %31 = vector.broadcast %cst_15 : f32 to vector<8x512xf32>
    %32 = arith.maximumf %30, %31 : vector<8x512xf32>
    %c0_16 = arith.constant 0 : index
    %c0_17 = arith.constant 0 : index
    %33 = vector.load %arg4[%c0_16, %c0_17] : memref<8x8xf32, #tpu.memory_space<vmem>>, vector<8x8xf32>
    %cst_18 = arith.constant dense<0.000000e+00> : vector<8x512xf32>
    %34 = tpu.matmul %33, %32, %cst_18 {dimension_numbers = #tpu.dot_dimension_numbers<[1], [0], [0], [1], [0, 0, 1, 1], [], []>} : vector<8x8xf32>, vector<8x512xf32>, vector<8x512xf32> -> vector<8x512xf32>
    %35 = vector.extract_strided_slice %5 {offsets = [2, 0, 0], sizes = [1, 8, 1], strides = [1, 1, 1]} : vector<3x8x1xf32> to vector<1x8x1xf32>
    %36 = vector.shape_cast %35 : vector<1x8x1xf32> to vector<8x1xf32>
    %37 = vector.broadcast %36 : vector<8x1xf32> to vector<8x512xf32>
    %38 = arith.addf %34, %37 : vector<8x512xf32>
    %39 = arith.addf %38, %4 : vector<8x512xf32>
    %cst_19 = arith.constant 0.000000e+00 : f32
    %40 = vector.broadcast %cst_19 : f32 to vector<8x512xf32>
    %41 = arith.maximumf %39, %40 : vector<8x512xf32>
    %42 = vector.extract_strided_slice %41 {offsets = [0, 0], sizes = [8, 256], strides = [1, 1]} : vector<8x512xf32> to vector<8x256xf32>
    %c0_20 = arith.constant 0 : index
    %c0_21 = arith.constant 0 : index
    %c0_22 = arith.constant 0 : index
    %43 = vector.load %arg7[%c0_20, %c0_21, %c0_22] : memref<2x8x256xf32, #tpu.memory_space<vmem>>, vector<1x8x256xf32>
    %44 = vector.shape_cast %43 : vector<1x8x256xf32> to vector<8x256xf32>
    %45 = vector.shape_cast %42 : vector<8x256xf32> to vector<1x8x256xf32>
    tpu.vector_store %arg7[%c0_20, %c0_21, %c0_22], %45 {strides = array<i32>} : memref<2x8x256xf32, #tpu.memory_space<vmem>>, vector<1x8x256xf32>,
    %46 = vector.extract_strided_slice %41 {offsets = [0, 256], sizes = [8, 256], strides = [1, 1]} : vector<8x512xf32> to vector<8x256xf32>
    %c1_23 = arith.constant 1 : index
    %c0_24 = arith.constant 0 : index
    %c0_25 = arith.constant 0 : index
    %47 = vector.load %arg7[%c1_23, %c0_24, %c0_25] : memref<2x8x256xf32, #tpu.memory_space<vmem>>, vector<1x8x256xf32>
    %48 = vector.shape_cast %47 : vector<1x8x256xf32> to vector<8x256xf32>
    %49 = vector.shape_cast %46 : vector<8x256xf32> to vector<1x8x256xf32>
    tpu.vector_store %arg7[%c1_23, %c0_24, %c0_25], %49 {strides = array<i32>} : memref<2x8x256xf32, #tpu.memory_space<vmem>>, vector<1x8x256xf32>,
    return
  }
  func.func @transform_0(%arg0: i32) -> (i32, i32, i32) {
    %c0_i32 = arith.constant 0 : i32
    %c0_i32_0 = arith.constant 0 : i32
    %c0_i32_1 = arith.constant 0 : i32
    return %arg0, %c0_i32, %c0_i32_0 : i32, i32, i32
  }
  func.func @transform_1(%arg0: i32) -> (i32, i32) {
    %c0_i32 = arith.constant 0 : i32
    %c0_i32_0 = arith.constant 0 : i32
    %c0_i32_1 = arith.constant 0 : i32
    return %c0_i32, %c0_i32_0 : i32, i32
  }
  func.func @transform_2(%arg0: i32) -> (i32, i32) {
    %c0_i32 = arith.constant 0 : i32
    %c0_i32_0 = arith.constant 0 : i32
    %c0_i32_1 = arith.constant 0 : i32
    return %c0_i32, %c0_i32_0 : i32, i32
  }
  func.func @transform_3(%arg0: i32) -> (i32, i32) {
    %c0_i32 = arith.constant 0 : i32
    %c0_i32_0 = arith.constant 0 : i32
    %c0_i32_1 = arith.constant 0 : i32
    return %c0_i32, %c0_i32_0 : i32, i32
  }
  func.func @transform_4(%arg0: i32) -> (i32, i32, i32) {
    %c0_i32 = arith.constant 0 : i32
    %c0_i32_0 = arith.constant 0 : i32
    %c0_i32_1 = arith.constant 0 : i32
    %c0_i32_2 = arith.constant 0 : i32
    return %c0_i32, %c0_i32_0, %c0_i32_1 : i32, i32, i32
  }
  func.func @transform_5(%arg0: i32) -> (i32, i32) {
    %c0_i32 = arith.constant 0 : i32
    %c0_i32_0 = arith.constant 0 : i32
    %c0_i32_1 = arith.constant 0 : i32
    return %c0_i32, %c0_i32_0 : i32, i32
  }
  func.func @transform_6(%arg0: i32) -> (i32, i32, i32) {
    %c0_i32 = arith.constant 0 : i32
    %c0_i32_0 = arith.constant 0 : i32
    %c0_i32_1 = arith.constant 0 : i32
    return %arg0, %c0_i32, %c0_i32_0 : i32, i32, i32
  }
}

</mosaic_0001>

<bundles_post_ra>
// kernel: tpu_custom_call.1
= control target key start
LH: loop header
LB: loop body
LE: loop exit
PB: predicated region body
PF: predicated region fallthrough
CT: control target
= control target key end

     0   :  { %11 = vsyncpa [#allocation3], 0  ;;  %s1122_s0 = inlined_call_operand.hbm [shape: f32[2,8,256], index: 0, kind: input, shape index: {}]   ;;  %s1123_s1 = inlined_call_operand.vmem [shape: f32[8,8], index: 1, kind: input, shape index: {}]   ;;  %s1124_s2 = inlined_call_operand.vmem [shape: f32[8,72], index: 2, kind: input, shape index: {}]   ;;  %s1125_s3 = inlined_call_operand.vmem [shape: f32[8,8], index: 3, kind: input, shape index: {}]   ;;  %s1126_s4 = inlined_call_operand.vmem [shape: f32[3,8,1], index: 4, kind: input, shape index: {}]   ;;  %s1127_s5 = inlined_call_operand.hbm [shape: f32[72,512], index: 5, kind: input, shape index: {}]   ;;  %s1128_s6 = inlined_call_operand.hbm [shape: f32[2,8,256], index: 6, kind: output, shape index: {}]  }
   0x1   :  { %12 = vsyncpa [#allocation6], 0 }
   0x2   :  { %13 = vsyncpa [#allocation4], 0  ;;  %s822_s21 = smov [#allocation2]  }
   0x3   :  { %s19_s22 = sshll.u32 %s822_s21, 4  ;;  %s20_s22 = int_to_ptr.vmem [resolvable:$true] %s19_s22 }
   0x4   :  { %s764_s23 = scalar_lea.vmem %s20_s22, 512  ;;  %p769_p1 = scmp.lt.s32.totalorder %s20_s22, %s20_s22 }
   0x5   :  { %p765_p0 = scmp.ne.s32.totalorder %s20_s22, %s764_s23  ;;  %p770_p2 = scmp.lt.s32.totalorder %s764_s23, %s764_s23 }
   0x7   :  { %p771_p3 = por %p770_p2, %p769_p1 }
   0x9   :  { %p772_p4 = pnand %p771_p3, %p765_p0 }
   0xb   :  { %775 = shalt.err (!%p772_p4)
}
   0xc   :  { %s823_s24 = smov 256   ;;  %s824_s25 = smov 16  }
   0xd   :  { %25 = dma.hbm_to_vmem [thread:$0]  %s1122_s0, 512, %s20_s22, [#allocation3], %s823_s24, %s823_s24, %s824_s25  }
   0xe   :  { %s825_s28 = smov [#allocation5]  }
   0xf   :  { %s39_s29 = sshll.u32 %s825_s28, 4  ;;  %s40_s29 = int_to_ptr.vmem [resolvable:$true] %s39_s29 }
  0x10   :  { %s784_s30 = scalar_lea.vmem %s40_s29, 4608  ;;  %p789_p6 = scmp.lt.s32.totalorder %s40_s29, %s40_s29 }
  0x11   :  { %p785_p5 = scmp.ne.s32.totalorder %s40_s29, %s784_s30  ;;  %p790_p7 = scmp.lt.s32.totalorder %s784_s30, %s784_s30 }
  0x13   :  { %p791_p8 = por %p790_p7, %p789_p6 }
  0x15   :  { %p792_p9 = pnand %p791_p8, %p785_p5 }
  0x17   :  { %795 = shalt.err (!%p792_p9)
}
  0x18   :  { %s826_s7 = smov 512   ;;  %s827_s8 = smov 32  }
  0x19   :  { %45 = dma.hbm_to_vmem [thread:$0]  %s1127_s5, 4608, %s40_s29, [#allocation6], %s826_s7, %s826_s7, %s827_s8  }
  0x1a   :  { %816 = dma.done.wait [#allocation3], 512  }
  0x1b   :  { %817 = vsyncadd [#allocation3], 4294966784 }
  0x1c   :  { %818 = dma.done.wait [#allocation6], 4608  }
  0x1d   :  { %819 = vsyncadd [#allocation6], 4294962688  ;;  %v828_v0 = vmov 0.0   ;;  %v829_v1 = vmov 0   ;;  %v884_v2 = vld [vmem:[#allocation2 + $0x8] sm:$0xff]  ;;  %v886_v3 = vld [vmem:[#allocation2 + $0x18] sm:$0xff]  ;;  %v224_v23 = vlaneseq }
  0x1e   :  { %134 = vmatprep.mubr.f32.mxu0 %v828_v0  ;;  %205 = vmatprep.mubr.f32.mxu1 %v828_v0  ;;  %v888_v4 = vld [vmem:[#allocation2] sm:$0xff]  ;;  %vm66_vm0 = vcmask 64512   ;;  %v892_v5 = vld [vmem:[#allocation2 + $0x10] sm:$0xff]  ;;  %s831_s13 = smov 112   ;;  %s832_s14 = smov 113   ;;  %v58_v22 = vld [vmem:[%s1126_s4 + $0x8] sm:$0xff] }
  0x1f   :  { %754 = vset.pattern.permute.xlu0 %v829_v1  ;;  %755 = vset.pattern.permute.xlu1 %v829_v1  ;;  %v60_v6 = vld [vmem:[%s1123_s1] sm:$0xff]  ;;  %s830_s1 = smov 111   ;;  %s833_s15 = smov 127   ;;  %v59_v21 = vld [vmem:[%s1126_s4 + $0x10] sm:$0xff]  ;;  %v960_v24 = vand.u32 127, %v224_v23  ;;  %v357_v28 = vld [vmem:[#allocation5 + $0x118] sm:$0xff] }
  0x20   :  { %100 = vmatprep.subr.mxu0 %v884_v2  ;;  %171 = vmatprep.subr.mxu1 %v886_v3  ;;  %v57_v7 = vld [vmem:[%s1126_s4] sm:$0xff]  ;;  %s834_s16 = smov 1   ;;  %s835_s17 = smov 15   ;;  %v356_v27 = vld [vmem:[#allocation5 + $0x110] sm:$0xff]  ;;  %v353_v38 = vld [vmem:[#allocation5 + $0xf8] sm:$0xff]  ;;  %vm400_vm9 = vcmask 588800  }
  0x21   :  { %101 = vmatpush1.msra.mxu0 %v888_v4  ;;  %172 = vmatpush1.msra.mxu1 %v892_v5  ;;  %s836_s18 = smov 17   ;;  %vm317_vm1 = vcmp.lt.s32.totalorder %v960_v24, 111  ;;  %v352_v37 = vld [vmem:[#allocation5 + $0xf0] sm:$0xff]  ;;  %vm304_vm2 = vcmp.lt.s32.totalorder %v960_v24, 112  ;;  %v349_v48 = vld [vmem:[#allocation5 + $0xd8] sm:$0xff]  ;;  %vm291_vm3 = vcmp.lt.s32.totalorder %v960_v24, 113 }
  0x22   :  { %732 = vmatmul.mubr.msk.f32.vlgmr.msra.gmra.mxu0 %vm66_vm0, %v60_v6  ;;  %733 = vmatmul.mubr.msk.f32.vlgmr.msra.gmra.mxu1 %vm66_vm0, %v60_v6  ;;  %v348_v47 = vld [vmem:[#allocation5 + $0xd0] sm:$0xff]  ;;  %v345_v58 = vld [vmem:[#allocation5 + $0xb8] sm:$0xff]  ;;  %vm278_vm4 = vcmp.lt.s32.totalorder %v960_v24, 127  ;;  %vm265_vm5 = vcmp.lt.s32.totalorder %v960_v24, 1  ;;  %vm252_vm6 = vcmp.lt.s32.totalorder %v960_v24, 15  ;;  %vm239_vm7 = vcmp.lt.s32.totalorder %v960_v24, 16 }
  0x23   :  { %63 = vperm.xlu0 %754, %v57_v7   ;;  %468 = vmatprep.mubr.f32.mxu0 %v828_v0  ;;  %v344_v57 = vld [vmem:[#allocation5 + $0xb0] sm:$0xff]  ;;  %v341_v63 = vld [vmem:[#allocation5 + $0x98] sm:$0xff]  ;;  %vm226_vm8 = vcmp.lt.s32.totalorder %v960_v24, 17 }
  0x24   :  { %539 = vmatprep.mubr.f32.mxu1 %v828_v0  ;;  %v340_v7 = vld [vmem:[#allocation5 + $0x90] sm:$0xff] }
  0x9e   :  { %v64_v8 = vpop.permute.xlu0 %63 }
  0xe2   :  { %v136_v9 = vpop.f32.mrf.mxu0  ;;  %v207_v10 = vpop.f32.mrf.mxu1 }
  0xe3   :  { %v137_v11 = vadd.f32 %v136_v9, %v64_v8  ;;  %v208_v12 = vadd.f32 %v207_v10, %v64_v8 }
  0xe4   :  { %v209_v13 = vpop.f32.mrf.mxu1  ;;  %v138_v17 = vpop.f32.mrf.mxu0 }
  0xe5   :  { %v906_v14 = vmax.f32 %v137_v11, 0.0  ;;  %v908_v15 = vmax.f32 %v208_v12, 0.0  ;;  %v210_v16 = vadd.f32 %v209_v13, %v64_v8  ;;  %v139_v18 = vadd.f32 %v138_v17, %v64_v8  ;;  %v337_v12 = vld [vmem:[#allocation5 + $0x78] sm:$0xff]  ;;  %v336_v13 = vld [vmem:[#allocation5 + $0x70] sm:$0xff] }
  0xe7   :  { %313 = vrot.lane.b32.xlu1 %v908_v15, %s830_s1  ;;  %309 = vrot.lane.b32.xlu0 %v906_v14, %s830_s1  ;;  %v914_v19 = vmax.f32 %v210_v16, 0.0  ;;  %v919_v20 = vmax.f32 %v139_v18, 0.0  ;;  %v376_v11 = vmul.f32 %v340_v7, %v908_v15  ;;  %v338_v7 = vld [vmem:[#allocation5 + $0x80] sm:$0xff] }
  0xe9   :  { %v377_v10 = vmul.f32 %v341_v63, %v914_v19  ;;  %v339_v63 = vld [vmem:[#allocation5 + $0x88] sm:$0xff] }
  0xeb   :  { %296 = vrot.lane.b32.xlu1 %v906_v14, %s831_s13  ;;  %315 = vrot.lane.b32.xlu0 %v914_v19, %s830_s1 }
  0xef   :  { %300 = vrot.lane.b32.xlu1 %v908_v15, %s831_s13  ;;  %298 = vrot.lane.b32.xlu0 %v919_v20, %s831_s13 }
  0xf3   :  { %283 = vrot.lane.b32.xlu1 %v906_v14, %s832_s14  ;;  %302 = vrot.lane.b32.xlu0 %v914_v19, %s831_s13 }
  0xf7   :  { %287 = vrot.lane.b32.xlu1 %v908_v15, %s832_s14  ;;  %285 = vrot.lane.b32.xlu0 %v919_v20, %s832_s14 }
  0xfb   :  { %270 = vrot.lane.b32.xlu1 %v906_v14, %s833_s15  ;;  %289 = vrot.lane.b32.xlu0 %v914_v19, %s832_s14 }
  0xff   :  { %274 = vrot.lane.b32.xlu1 %v908_v15, %s833_s15  ;;  %272 = vrot.lane.b32.xlu0 %v919_v20, %s833_s15 }
 0x103   :  { %257 = vrot.lane.b32.xlu1 %v906_v14, %s834_s16  ;;  %276 = vrot.lane.b32.xlu0 %v914_v19, %s833_s15 }
 0x107   :  { %261 = vrot.lane.b32.xlu1 %v908_v15, %s834_s16  ;;  %259 = vrot.lane.b32.xlu0 %v919_v20, %s834_s16 }
 0x10b   :  { %244 = vrot.lane.b32.xlu1 %v906_v14, %s835_s17  ;;  %263 = vrot.lane.b32.xlu0 %v914_v19, %s834_s16 }
 0x10f   :  { %248 = vrot.lane.b32.xlu1 %v908_v15, %s835_s17  ;;  %246 = vrot.lane.b32.xlu0 %v919_v20, %s835_s17 }
 0x113   :  { %311 = vrot.lane.b32.xlu1 %v919_v20, %s830_s1  ;;  %250 = vrot.lane.b32.xlu0 %v914_v19, %s835_s17 }
 0x117   :  { %231 = vrot.lane.b32.xlu1 %v906_v14, %s824_s25  ;;  %233 = vrot.lane.b32.xlu0 %v919_v20, %s824_s25 }
 0x11b   :  { %235 = vrot.lane.b32.xlu1 %v908_v15, %s824_s25  ;;  %237 = vrot.lane.b32.xlu0 %v914_v19, %s824_s25 }
 0x11f   :  { %216 = vrot.lane.b32.xlu1 %v906_v14, %s836_s18  ;;  %218 = vrot.lane.b32.xlu0 %v919_v20, %s836_s18 }
 0x123   :  { %220 = vrot.lane.b32.xlu1 %v908_v15, %s836_s18  ;;  %222 = vrot.lane.b32.xlu0 %v914_v19, %s836_s18 }
 0x127   :  { %553 = vperm.xlu0 %754, %v59_v21   ;;  %397 = vperm.xlu1 %755, %v58_v22  }
 0x159   :  { %v962_v25 = vpop.permute.xlu1 %313  ;;  %v964_v26 = vpop.permute.xlu0 %309 }
 0x15d   :  { %v967_v29 = vpop.permute.xlu1 %296  ;;  %v316_v30 = vpop.permute.xlu0 %315 }
 0x15e   :  { %v318_v31 = vsel %vm317_vm1, %v962_v25, %v316_v30  ;;  %v321_v32 = vsel %vm317_vm1, %v316_v30, %v964_v26  ;;  %v333_v30 = vld [vmem:[#allocation5 + $0x58] sm:$0xff] }
 0x15f   :  { %v392_v33 = vmul.f32 %v356_v27, %v318_v31  ;;  %v393_v34 = vmul.f32 %v357_v28, %v321_v32  ;;  %v354_v27 = vld [vmem:[#allocation5 + $0x100] sm:$0xff]  ;;  %v355_v28 = vld [vmem:[#allocation5 + $0x108] sm:$0xff]  ;;  %v332_v31 = vld [vmem:[#allocation5 + $0x50] sm:$0xff] }
 0x161   :  { %v975_v35 = vpop.permute.xlu1 %300  ;;  %489 = vmatprep.subr.mxu1 %v393_v34  ;;  %v977_v36 = vpop.permute.xlu0 %298 }
 0x162   :  { %490 = vmatpush1.msra.mxu1 %v392_v33 }
 0x165   :  { %v980_v39 = vpop.permute.xlu1 %283  ;;  %v303_v40 = vpop.permute.xlu0 %302 }
 0x166   :  { %v305_v41 = vsel %vm304_vm2, %v975_v35, %v303_v40  ;;  %v308_v42 = vsel %vm304_vm2, %v303_v40, %v967_v29 }
 0x167   :  { %v388_v43 = vmul.f32 %v352_v37, %v305_v41  ;;  %v389_v44 = vmul.f32 %v353_v38, %v308_v42  ;;  %v351_v37 = vld [vmem:[#allocation5 + $0xe8] sm:$0xff]  ;;  %v306_v38 = vsel %vm304_vm2, %v977_v36, %v975_v35 }
 0x169   :  { %v988_v45 = vpop.permute.xlu1 %287  ;;  %491 = vmatprep.subr.mxu1 %v389_v44  ;;  %v990_v46 = vpop.permute.xlu0 %285  ;;  %v307_v44 = vsel %vm304_vm2, %v967_v29, %v977_v36 }
 0x16a   :  { %492 = vmatpush1.msra.mxu1 %v388_v43  ;;  %v350_v43 = vld [vmem:[#allocation5 + $0xe0] sm:$0xff] }
 0x16b   :  { %v386_v36 = vmul.f32 %v350_v43, %v307_v44 }
 0x16d   :  { %v993_v49 = vpop.permute.xlu1 %270  ;;  %v290_v50 = vpop.permute.xlu0 %289 }
 0x16e   :  { %v292_v51 = vsel %vm291_vm3, %v988_v45, %v290_v50  ;;  %v295_v52 = vsel %vm291_vm3, %v290_v50, %v980_v39  ;;  %v347_v50 = vld [vmem:[#allocation5 + $0xc8] sm:$0xff] }
 0x16f   :  { %v384_v53 = vmul.f32 %v348_v47, %v292_v51  ;;  %v385_v54 = vmul.f32 %v349_v48, %v295_v52  ;;  %v346_v52 = vld [vmem:[#allocation5 + $0xc0] sm:$0xff] }
 0x171   :  { %v1001_v55 = vpop.permute.xlu1 %274  ;;  %493 = vmatprep.subr.mxu1 %v385_v54  ;;  %v1003_v56 = vpop.permute.xlu0 %272 }
 0x172   :  { %494 = vmatpush1.msra.mxu1 %v384_v53  ;;  %v294_v53 = vsel %vm291_vm3, %v980_v39, %v990_v46  ;;  %v281_v39 = vsel %vm278_vm4, %v993_v49, %v1003_v56 }
 0x175   :  { %v1006_v59 = vpop.permute.xlu1 %257  ;;  %v277_v60 = vpop.permute.xlu0 %276 }
 0x176   :  { %v279_v61 = vsel %vm278_vm4, %v1001_v55, %v277_v60  ;;  %v282_v62 = vsel %vm278_vm4, %v277_v60, %v993_v49  ;;  %v342_v60 = vld [vmem:[#allocation5 + $0xa0] sm:$0xff] }
 0x177   :  { %v380_v1 = vmul.f32 %v344_v57, %v279_v61  ;;  %v381_v6 = vmul.f32 %v345_v58, %v282_v62  ;;  %v343_v57 = vld [vmem:[#allocation5 + $0xa8] sm:$0xff]  ;;  %v280_v58 = vsel %vm278_vm4, %v1003_v56, %v1001_v55  ;;  %v328_v61 = vld [vmem:[#allocation5 + $0x30] sm:$0xff]  ;;  %v329_v62 = vld [vmem:[#allocation5 + $0x38] sm:$0xff] }
 0x179   :  { %v262_v8 = vpop.permute.xlu1 %261  ;;  %495 = vmatprep.subr.mxu1 %v381_v6  ;;  %v1014_v9 = vpop.permute.xlu0 %259 }
 0x17a   :  { %496 = vmatpush1.msra.mxu1 %v380_v1  ;;  %v267_v16 = vsel %vm265_vm5, %v1014_v9, %v262_v8  ;;  %v379_v1 = vmul.f32 %v343_v57, %v280_v58  ;;  %v268_v49 = vsel %vm265_vm5, %v1006_v59, %v1014_v9 }
 0x17b   :  { %497 = vmatprep.subr.mxu1 %v377_v10  ;;  %v372_v22 = vmul.f32 %v336_v13, %v267_v16  ;;  %v335_v10 = vld [vmem:[#allocation5 + $0x68] sm:$0xff] }
 0x17c   :  { %498 = vmatpush1.msra.mxu1 %v376_v11 }
 0x17d   :  { %v1022_v17 = vpop.permute.xlu1 %244  ;;  %v1024_v18 = vpop.permute.xlu0 %263 }
 0x17e   :  { %v266_v19 = vsel %vm265_vm5, %v262_v8, %v1024_v18  ;;  %v378_v8 = vmul.f32 %v342_v60, %v281_v39  ;;  %v269_v13 = vsel %vm265_vm5, %v1024_v18, %v1006_v59 }
 0x17f   :  { %v373_v21 = vmul.f32 %v337_v12, %v266_v19  ;;  %v334_v12 = vld [vmem:[#allocation5 + $0x60] sm:$0xff] }
 0x181   :  { %v249_v23 = vpop.permute.xlu1 %248  ;;  %499 = vmatprep.subr.mxu1 %v373_v21  ;;  %v1029_v15 = vpop.permute.xlu0 %246  ;;  %v375_v21 = vmul.f32 %v339_v63, %v919_v20 }
 0x182   :  { %500 = vmatpush1.msra.mxu1 %v372_v22  ;;  %v254_v32 = vsel %vm252_vm6, %v1029_v15, %v249_v23  ;;  %v331_v22 = vld [vmem:[#allocation5 + $0x48] sm:$0xff]  ;;  %v255_v9 = vsel %vm252_vm6, %v1022_v17, %v1029_v15 }
 0x183   :  { %v368_v51 = vmul.f32 %v332_v31, %v254_v32  ;;  %v327_v31 = vld [vmem:[#allocation5 + $0x28] sm:$0xff]  ;;  %v326_v32 = vld [vmem:[#allocation5 + $0x20] sm:$0xff] }
 0x185   :  { %v312_v33 = vpop.permute.xlu1 %311  ;;  %v251_v34 = vpop.permute.xlu0 %250 }
 0x186   :  { %v319_v40 = vsel %vm317_vm1, %v312_v33, %v962_v25  ;;  %v320_v41 = vsel %vm317_vm1, %v964_v26, %v312_v33  ;;  %v253_v42 = vsel %vm252_vm6, %v249_v23, %v251_v34  ;;  %v293_v25 = vsel %vm291_vm3, %v990_v46, %v988_v45 }
 0x187   :  { %v390_v47 = vmul.f32 %v354_v27, %v320_v41  ;;  %v391_v48 = vmul.f32 %v355_v28, %v319_v40  ;;  %v369_v35 = vmul.f32 %v333_v30, %v253_v42  ;;  %v387_v26 = vmul.f32 %v351_v37, %v306_v38  ;;  %v330_v28 = vld [vmem:[#allocation5 + $0x40] sm:$0xff]  ;;  %v323_v37 = vld [vmem:[#allocation5 + $0x8] sm:$0xff]  ;;  %v324_v38 = vld [vmem:[#allocation5 + $0x10] sm:$0xff] }
 0x188   :  { %v383_v45 = vmul.f32 %v347_v50, %v293_v25  ;;  %v382_v46 = vmul.f32 %v346_v52, %v294_v53  ;;  %v374_v23 = vmul.f32 %v338_v7, %v906_v14  ;;  %v371_v27 = vmul.f32 %v335_v10, %v268_v49  ;;  %v322_v40 = vld [vmem:[#allocation5] sm:$0xff]  ;;  %v325_v41 = vld [vmem:[#allocation5 + $0x18] sm:$0xff] }
 0x189   :  { %418 = vmatprep.subr.mxu0 %v391_v48  ;;  %v232_v54 = vpop.permute.xlu1 %231  ;;  %501 = vmatprep.subr.mxu1 %v369_v35  ;;  %v234_v29 = vpop.permute.xlu0 %233  ;;  %v256_v59 = vsel %vm252_vm6, %v251_v34, %v1022_v17  ;;  %v370_v30 = vmul.f32 %v334_v12, %v269_v13  ;;  %v367_v14 = vmul.f32 %v331_v22, %v255_v9  ;;  %v394_v53 = vld [vmem:[%s1124_s2] sm:$0xff] }
 0x18a   :  { %419 = vmatpush1.msra.mxu0 %v390_v47  ;;  %502 = vmatpush1.msra.mxu1 %v368_v51  ;;  %v242_v15 = vsel %vm239_vm7, %v232_v54, %v234_v29  ;;  %v366_v17 = vmul.f32 %v330_v28, %v256_v59 }
 0x18b   :  { %420 = vmatprep.subr.mxu0 %v387_v26  ;;  %v363_v42 = vmul.f32 %v327_v31, %v242_v15 }
 0x18c   :  { %421 = vmatpush1.msra.mxu0 %v386_v36 }
 0x18d   :  { %v236_v6 = vpop.permute.xlu1 %235  ;;  %422 = vmatprep.subr.mxu0 %v383_v45  ;;  %v238_v55 = vpop.permute.xlu0 %237 }
 0x18e   :  { %v241_v56 = vsel %vm239_vm7, %v234_v29, %v236_v6  ;;  %v240_v11 = vsel %vm239_vm7, %v236_v6, %v238_v55  ;;  %423 = vmatpush1.msra.mxu0 %v382_v46  ;;  %v243_v33 = vsel %vm239_vm7, %v238_v55, %v232_v54 }
 0x18f   :  { %v364_v16 = vmul.f32 %v328_v61, %v241_v56  ;;  %v365_v19 = vmul.f32 %v329_v62, %v240_v11  ;;  %424 = vmatprep.subr.mxu0 %v379_v1  ;;  %v362_v47 = vmul.f32 %v326_v32, %v243_v33  ;;  %v550_v1 = vld [vmem:[%s1125_s3] sm:$0xff]  ;;  %s837_s3 = smov [#allocation7]  }
 0x190   :  { %425 = vmatpush1.msra.mxu0 %v378_v8  ;;  %s719_s27 = sshll.u32 %s837_s3, 4  ;;  %s720_s27 = int_to_ptr.vmem [resolvable:$true] %s719_s27 }
 0x191   :  { %v217_v18 = vpop.permute.xlu1 %216  ;;  %426 = vmatprep.subr.mxu0 %v375_v21  ;;  %503 = vmatprep.subr.mxu1 %v365_v19  ;;  %v219_v20 = vpop.permute.xlu0 %218  ;;  %s796_s28 = scalar_lea.vmem %s720_s27, 512  ;;  %p801_p11 = scmp.lt.s32.totalorder %s720_s27, %s720_s27 }
 0x192   :  { %427 = vmatpush1.msra.mxu0 %v374_v23  ;;  %504 = vmatpush1.msra.mxu1 %v364_v16  ;;  %v229_v34 = vsel %vm226_vm8, %v217_v18, %v219_v20  ;;  %p797_p10 = scmp.ne.s32.totalorder %s720_s27, %s796_s28  ;;  %p802_p12 = scmp.lt.s32.totalorder %s796_s28, %s796_s28 }
 0x193   :  { %428 = vmatprep.subr.mxu0 %v371_v27  ;;  %v359_v25 = vmul.f32 %v323_v37, %v229_v34 }
 0x194   :  { %429 = vmatpush1.msra.mxu0 %v370_v30  ;;  %p803_p13 = por %p802_p12, %p801_p11 }
 0x195   :  { %v221_v43 = vpop.permute.xlu1 %220  ;;  %v223_v44 = vpop.permute.xlu0 %222  ;;  %430 = vmatprep.subr.mxu0 %v367_v14 }
 0x196   :  { %v228_v48 = vsel %vm226_vm8, %v219_v20, %v221_v43  ;;  %v227_v35 = vsel %vm226_vm8, %v221_v43, %v223_v44  ;;  %v230_v50 = vsel %vm226_vm8, %v223_v44, %v217_v18  ;;  %431 = vmatpush1.msra.mxu0 %v366_v17  ;;  %p804_p0 = pnand %p803_p13, %p797_p10 }
 0x197   :  { %v360_v51 = vmul.f32 %v324_v38, %v228_v48  ;;  %v358_v26 = vmul.f32 %v322_v40, %v230_v50  ;;  %v361_v52 = vmul.f32 %v325_v41, %v227_v35  ;;  %432 = vmatprep.subr.mxu0 %v363_v42 }
 0x198   :  { %433 = vmatpush1.msra.mxu0 %v362_v47 }
 0x199   :  { %434 = vmatprep.subr.mxu0 %v359_v25  ;;  %505 = vmatprep.subr.mxu1 %v361_v52 }
 0x19a   :  { %435 = vmatpush1.msra.mxu0 %v358_v26  ;;  %506 = vmatpush1.msra.mxu1 %v360_v51 }
 0x19b   :  { %734 = vmatmul.mubr.msk.f32.vlgmr.msra.gmra.mxu0 %vm400_vm9, %v394_v53  ;;  %735 = vmatmul.mubr.msk.f32.vlgmr.msra.gmra.mxu1 %vm400_vm9, %v394_v53 }
 0x19c   :  { %623 = vmatprep.mubr.f32.mxu0 %v828_v0  ;;  %694 = vmatprep.mubr.f32.mxu1 %v828_v0 }
 0x1a2   :  { %v398_v24 = vpop.permute.xlu1 %397  ;;  %v554_v0 = vpop.permute.xlu0 %553 }
 0x25b   :  { %v470_v54 = vpop.f32.mrf.mxu0  ;;  %v541_v29 = vpop.f32.mrf.mxu1 }
 0x25c   :  { %v471_v36 = vadd.f32 %v470_v54, %v398_v24  ;;  %v542_v57 = vadd.f32 %v541_v29, %v398_v24 }
 0x25d   :  { %v472_v58 = vpop.f32.mrf.mxu0  ;;  %v543_v45 = vpop.f32.mrf.mxu1 }
 0x25e   :  { %v473_v60 = vadd.f32 %v472_v58, %v398_v24  ;;  %v544_v39 = vadd.f32 %v543_v45, %v398_v24  ;;  %v546_v62 = vmax.f32 %v471_v36, 0.0  ;;  %v548_v63 = vmax.f32 %v542_v57, 0.0 }
 0x260   :  { %v547_v46 = vmax.f32 %v473_v60, 0.0  ;;  %v549_v61 = vmax.f32 %v544_v39, 0.0 }
 0x262   :  { %589 = vmatprep.subr.mxu0 %v547_v46  ;;  %660 = vmatprep.subr.mxu1 %v549_v61 }
 0x263   :  { %590 = vmatpush1.msra.mxu0 %v546_v62  ;;  %661 = vmatpush1.msra.mxu1 %v548_v63 }
 0x264   :  { %736 = vmatmul.mubr.msk.f32.vlgmr.msra.gmra.mxu0 %vm66_vm0, %v550_v1  ;;  %737 = vmatmul.mubr.msk.f32.vlgmr.msra.gmra.mxu1 %vm66_vm0, %v550_v1 }
 0x324   :  { %v625_v6 = vpop.f32.mrf.mxu0  ;;  %v696_v55 = vpop.f32.mrf.mxu1 }
 0x325   :  { %v626_v7 = vadd.f32 %v625_v6, %v554_v0  ;;  %v697_v8 = vadd.f32 %v696_v55, %v554_v0 }
 0x326   :  { %v627_v10 = vpop.f32.mrf.mxu0  ;;  %v698_v49 = vpop.f32.mrf.mxu1 }
 0x327   :  { %v701_v56 = vadd.f32 %v626_v7, %v888_v4  ;;  %v703_v11 = vadd.f32 %v697_v8, %v892_v5  ;;  %v628_v12 = vadd.f32 %v627_v10, %v554_v0  ;;  %v699_v13 = vadd.f32 %v698_v49, %v554_v0 }
 0x329   :  { %v705_v16 = vmax.f32 %v701_v56, 0.0  ;;  %v707_v19 = vmax.f32 %v703_v11, 0.0  ;;  %v702_v21 = vadd.f32 %v628_v12, %v884_v2  ;;  %v704_v22 = vadd.f32 %v699_v13, %v886_v3 }
 0x32b   :  { %709 = vst [vmem:[#allocation7] sm:$0xff] %v705_v16  ;;  %712 = vst [vmem:[#allocation7 + $0x10] sm:$0xff] %v707_v19  ;;  %v706_v9 = vmax.f32 %v702_v21, 0.0  ;;  %v708_v23 = vmax.f32 %v704_v22, 0.0 }
 0x32d   :  { %710 = vst [vmem:[#allocation7 + $0x8] sm:$0xff] %v706_v9  ;;  %713 = vst [vmem:[#allocation7 + $0x18] sm:$0xff] %v708_v23 }
 0x32e   :  { %807 = shalt.err (!%p804_p0)
}
 0x32f   :  { %725 = dma.vmem_to_hbm [thread:$0]  %s720_s27, 512, %s1128_s6, [#allocation4], %s823_s24, %s823_s24, %s824_s25  }
 0x330   :  { %820 = dma.done.wait [#allocation4], 512  }
 0x331   :  { %821 = vsyncadd [#allocation4], 4294966784 }
 0x332   :  { %729 = vsyncpa [#allocation3], 1 }
 0x333   :  { %730 = vsyncpa [#allocation6], 1 }
 0x334   :  { %731 = vsyncpa [#allocation4], 1 }

</bundles_post_ra>
